<compile_context>
chip_gen: v6e
topology: v6e:2x2x1
jax: 0.10.0
libtpu: 0.0.40
codegen_flags: <defaults>
</compile_context>

<pallas_src>
import functools

import jax
import jax.numpy as jnp
from jax import lax
from jax.experimental import pallas as pl
from jax.experimental.pallas import tpu as pltpu


def _pick_row_tile(batch_size):
    """Largest sublane-aligned row tile (<=256) that divides the batch."""
    for t in (256, 128, 64, 32, 16, 8):
        if batch_size % t == 0:
            return t
    return batch_size  # single (possibly unaligned) block fallback


def _nt_xent_kernel(zi_ref, zj_ref, o_ref,
                    zin_ref, zjn_ref, m_j_ref, l_j_ref, acc_i_ref, acc_p_ref,
                    *, batch_size, row_tile, temperature):
    B = batch_size
    TQ = row_tile
    inv_t = jnp.float32(1.0 / temperature)
    q = pl.program_id(0)

    # ---- one-time init: normalize both views into VMEM scratch, zero accums ----
    @pl.when(q == 0)
    def _init():
        eps2 = jnp.float32(1e-24)  # (1e-12)^2 -> matches F.normalize eps
        zi = zi_ref[...].astype(jnp.float32)
        zj = zj_ref[...].astype(jnp.float32)
        zi = zi * lax.rsqrt(jnp.maximum(jnp.sum(zi * zi, axis=-1, keepdims=True), eps2))
        zj = zj * lax.rsqrt(jnp.maximum(jnp.sum(zj * zj, axis=-1, keepdims=True), eps2))
        zin_ref[...] = zi.astype(zin_ref.dtype)
        zjn_ref[...] = zj.astype(zjn_ref.dtype)
        m_j_ref[...] = jnp.full(m_j_ref.shape, -jnp.inf, dtype=jnp.float32)
        l_j_ref[...] = jnp.zeros(l_j_ref.shape, dtype=jnp.float32)
        acc_i_ref[...] = jnp.zeros(acc_i_ref.shape, dtype=jnp.float32)
        acc_p_ref[...] = jnp.zeros(acc_p_ref.shape, dtype=jnp.float32)

    # ---- current row block of normalized zi / zj ----
    row0 = pl.multiple_of(q * TQ, TQ)
    zi_q = zin_ref[pl.ds(row0, TQ), :]
    zj_q = zjn_ref[pl.ds(row0, TQ), :]
    zin = zin_ref[...]
    zjn = zjn_ref[...]

    # A @ B^T on the MXU without materializing a transpose.
    dn = (((1,), (1,)), ((), ()))
    ij = lax.dot_general(zi_q, zjn, dimension_numbers=dn,
                         preferred_element_type=jnp.float32) * inv_t   # (TQ, B)
    ii = lax.dot_general(zi_q, zin, dimension_numbers=dn,
                         preferred_element_type=jnp.float32) * inv_t   # (TQ, B)
    jj = lax.dot_general(zj_q, zjn, dimension_numbers=dn,
                         preferred_element_type=jnp.float32) * inv_t   # (TQ, B)

    # Block-local diagonal mask (-1e9 on the self-similarity diagonal).
    lrow = lax.broadcasted_iota(jnp.int32, (TQ, B), 0)
    col = lax.broadcasted_iota(jnp.int32, (TQ, B), 1)
    neg = jnp.where(col == lrow + row0, jnp.float32(1.0e9), jnp.float32(0.0))
    ii = ii - neg
    jj = jj - neg

    # loss_i: full row-wise logsumexp over the virtual concat [ij, ii] (this block).
    m_i = jnp.maximum(jnp.max(ij, axis=-1, keepdims=True),
                      jnp.max(ii, axis=-1, keepdims=True))              # (TQ, 1)
    l_i = (jnp.sum(jnp.exp(ij - m_i), axis=-1, keepdims=True)
           + jnp.sum(jnp.exp(ii - m_i), axis=-1, keepdims=True))        # (TQ, 1)
    acc_i_ref[...] += jnp.sum(m_i + jnp.log(l_i), axis=0, keepdims=True)

    # loss_j: online column-wise logsumexp (columns of ij and jj == rows of ji/jj).
    col_max = jnp.maximum(jnp.max(ij, axis=0, keepdims=True),
                          jnp.max(jj, axis=0, keepdims=True))           # (1, B)
    m_old = m_j_ref[...]
    m_new = jnp.maximum(m_old, col_max)
    col_sum = (jnp.sum(jnp.exp(ij - m_new), axis=0, keepdims=True)
               + jnp.sum(jnp.exp(jj - m_new), axis=0, keepdims=True))   # (1, B)
    l_j_ref[...] = l_j_ref[...] * jnp.exp(m_old - m_new) + col_sum
    m_j_ref[...] = m_new

    # positive-pair (label) logits: diag(ij) == diag(ji) == rowwise dot / t.
    prod = zi_q.astype(jnp.float32) * zj_q.astype(jnp.float32)
    pos_blk = jnp.sum(jnp.sum(prod, axis=-1, keepdims=True),
                      axis=0, keepdims=True) * inv_t                    # (1, 1)
    acc_p_ref[...] += pos_blk

    # ---- finalize on the last block ----
    @pl.when(q == pl.num_programs(0) - 1)
    def _finalize():
        lse_j = m_j_ref[...] + jnp.log(l_j_ref[...])                    # (1, B)
        total = (acc_i_ref[...]
                 + jnp.sum(lse_j, axis=-1, keepdims=True)
                 - 2.0 * acc_p_ref[...])                                # (1, 1)
        o_ref[...] = total * jnp.float32(1.0 / (2 * B))


def nt_xent_loss(z_i, z_j, *, temperature=1.0, row_tile=None):
    """Pallas NT-Xent loss. z_i, z_j: (B, D). Returns scalar float32 loss."""
    assert z_i.shape == z_j.shape and z_i.ndim == 2
    B, D = z_i.shape
    TQ = row_tile if row_tile is not None else _pick_row_tile(B)
    assert B % TQ == 0
    num_blocks = B // TQ

    # bf16 inputs -> bf16 MXU operands (f32 accumulation); otherwise f32.
    mm_dtype = jnp.bfloat16 if z_i.dtype == jnp.bfloat16 else jnp.float32

    kernel = functools.partial(
        _nt_xent_kernel, batch_size=B, row_tile=TQ, temperature=float(temperature)
    )
    itemsize = jnp.dtype(z_i.dtype).itemsize
    cost = pl.CostEstimate(
        flops=int(6 * B * B * D + 10 * B * D),
        transcendentals=int(4 * B * B + 2 * B),
        bytes_accessed=int(2 * B * D * itemsize + 4),
    )

    out = pl.pallas_call(
        kernel,
        out_shape=jax.ShapeDtypeStruct((1, 1), jnp.float32),
        grid=(num_blocks,),
        in_specs=[
            pl.BlockSpec(memory_space=pltpu.MemorySpace.VMEM),
            pl.BlockSpec(memory_space=pltpu.MemorySpace.VMEM),
        ],
        out_specs=pl.BlockSpec(memory_space=pltpu.MemorySpace.VMEM),
        scratch_shapes=[
            pltpu.VMEM((B, D), mm_dtype),      # normalized z_i
            pltpu.VMEM((B, D), mm_dtype),      # normalized z_j
            pltpu.VMEM((1, B), jnp.float32),   # running column max   (loss_j)
            pltpu.VMEM((1, B), jnp.float32),   # running column sumexp(loss_j)
            pltpu.VMEM((1, 1), jnp.float32),   # sum of row logsumexp (loss_i)
            pltpu.VMEM((1, 1), jnp.float32),   # sum of positive-pair logits
        ],
        compiler_params=pltpu.CompilerParams(
            dimension_semantics=("arbitrary",),
            vmem_limit_bytes=48 * 1024 * 1024,
        ),
        cost_estimate=cost,
    )(z_i, z_j)
    return out[0, 0]


def nt_xent_reference(z_i, z_j, *, temperature=1.0):
    """Pure-JAX reference mirroring the PyTorch module exactly."""
    B = z_i.shape[0]
    zi = z_i / jnp.maximum(jnp.linalg.norm(z_i, axis=-1, keepdims=True), 1e-12)
    zj = z_j / jnp.maximum(jnp.linalg.norm(z_j, axis=-1, keepdims=True), 1e-12)
    mask = jnp.eye(B, dtype=jnp.float32) * 1.0e9
    logits_ii = zi @ zi.T / temperature - mask
    logits_jj = zj @ zj.T / temperature - mask
    logits_ij = zi @ zj.T / temperature
    logits_ji = zj @ zi.T / temperature
    logits_i = jnp.concatenate([logits_ij, logits_ii], axis=1)
    logits_j = jnp.concatenate([logits_ji, logits_jj], axis=1)
    labels = jax.nn.one_hot(jnp.arange(B), 2 * B, dtype=jnp.float32)
    loss_i = jnp.sum(-labels * jax.nn.log_softmax(logits_i, axis=-1))
    loss_j = jnp.sum(-labels * jax.nn.log_softmax(logits_j, axis=-1))
    return (loss_i + loss_j) / (2 * B)


if __name__ == "__main__":
    B, D = 32, 128
    temperature = 0.5

    key = jax.random.PRNGKey(0)
    k1, k2 = jax.random.split(key)
    z_i = jax.random.normal(k1, (B, D), dtype=jnp.float32)
    z_j = jax.random.normal(k2, (B, D), dtype=jnp.float32)

    ref = jax.block_until_ready(nt_xent_reference(z_i, z_j, temperature=temperature))

    # Multi-block path (exercises the online column logsumexp accumulation).
    loss_tiled = jax.block_until_ready(
        nt_xent_loss(z_i, z_j, temperature=temperature, row_tile=8)
    )
    # Single-block path (default tile selection).
    loss_single = jax.block_until_ready(
        nt_xent_loss(z_i, z_j, temperature=temperature)
    )

    assert jnp.allclose(loss_tiled, ref, rtol=2e-5, atol=2e-5), (loss_tiled, ref)
    assert jnp.allclose(loss_single, ref, rtol=2e-5, atol=2e-5), (loss_single, ref)
    print("KERNEL_OK")
</pallas_src>

<mosaic_0001>
module attributes {stable_mosaic.version = 11 : i64} {
  func.func @_nt_xent_kernel(%arg0: i32, %arg1: memref<32x128xf32, #tpu.memory_space<vmem>>, %arg2: memref<32x128xf32, #tpu.memory_space<vmem>>, %arg3: memref<1x1xf32, #tpu.memory_space<vmem>>, %arg4: memref<32x128xf32, #tpu.memory_space<vmem>>, %arg5: memref<32x128xf32, #tpu.memory_space<vmem>>, %arg6: memref<1x32xf32, #tpu.memory_space<vmem>>, %arg7: memref<1x32xf32, #tpu.memory_space<vmem>>, %arg8: memref<1x1xf32, #tpu.memory_space<vmem>>, %arg9: memref<1x1xf32, #tpu.memory_space<vmem>>) attributes {dimension_semantics = [#tpu.dimension_semantics<arbitrary>], iteration_bounds = array<i64: 4>, scalar_prefetch = 0 : i64, scratch_operands = 6 : i64, tpu.core_type = #tpu.core_type<tc>, window_params = [{pipeline_mode = #tpu.pipeline_mode<synchronous>, transform_indices = @transform_0, window_bounds = array<i64: 32, 128>}, {pipeline_mode = #tpu.pipeline_mode<synchronous>, transform_indices = @transform_1, window_bounds = array<i64: 32, 128>}, {pipeline_mode = #tpu.pipeline_mode<synchronous>, transform_indices = @transform_2, window_bounds = array<i64: 1, 1>}]} {
    %c0_i32 = arith.constant 0 : i32
    %0 = arith.cmpi eq, %arg0, %c0_i32 : i32
    %1 = arith.extui %0 : i1 to i32
    %c0_i32_0 = arith.constant 0 : i32
    %2 = arith.cmpi ne, %1, %c0_i32_0 : i32
    scf.if %2 {
      %c0_42 = arith.constant 0 : index
      %c0_43 = arith.constant 0 : index
      %91 = vector.load %arg1[%c0_42, %c0_43] : memref<32x128xf32, #tpu.memory_space<vmem>>, vector<32x128xf32>
      %c0_44 = arith.constant 0 : index
      %c0_45 = arith.constant 0 : index
      %92 = vector.load %arg2[%c0_44, %c0_45] : memref<32x128xf32, #tpu.memory_space<vmem>>, vector<32x128xf32>
      %93 = arith.mulf %91, %91 : vector<32x128xf32>
      %cst_46 = arith.constant dense<0.000000e+00> : vector<32xf32>
      %94 = vector.multi_reduction <add>, %93, %cst_46 [1] : vector<32x128xf32> to vector<32xf32>
      %95 = vector.shape_cast %94 : vector<32xf32> to vector<32x1xf32>
      %cst_47 = arith.constant 1.000000e-24 : f32
      %96 = vector.broadcast %cst_47 : f32 to vector<32x1xf32>
      %97 = arith.maximumf %95, %96 : vector<32x1xf32>
      %98 = math.rsqrt %97 : vector<32x1xf32>
      %99 = vector.broadcast %98 : vector<32x1xf32> to vector<32x128xf32>
      %100 = arith.mulf %91, %99 : vector<32x128xf32>
      %101 = arith.mulf %92, %92 : vector<32x128xf32>
      %cst_48 = arith.constant dense<0.000000e+00> : vector<32xf32>
      %102 = vector.multi_reduction <add>, %101, %cst_48 [1] : vector<32x128xf32> to vector<32xf32>
      %103 = vector.shape_cast %102 : vector<32xf32> to vector<32x1xf32>
      %cst_49 = arith.constant 1.000000e-24 : f32
      %104 = vector.broadcast %cst_49 : f32 to vector<32x1xf32>
      %105 = arith.maximumf %103, %104 : vector<32x1xf32>
      %106 = math.rsqrt %105 : vector<32x1xf32>
      %107 = vector.broadcast %106 : vector<32x1xf32> to vector<32x128xf32>
      %108 = arith.mulf %92, %107 : vector<32x128xf32>
      %c0_50 = arith.constant 0 : index
      %c0_51 = arith.constant 0 : index
      %109 = vector.load %arg4[%c0_50, %c0_51] : memref<32x128xf32, #tpu.memory_space<vmem>>, vector<32x128xf32>
      tpu.vector_store %arg4[%c0_50, %c0_51], %100 {strides = array<i32>} : memref<32x128xf32, #tpu.memory_space<vmem>>, vector<32x128xf32>,
      %c0_52 = arith.constant 0 : index
      %c0_53 = arith.constant 0 : index
      %110 = vector.load %arg5[%c0_52, %c0_53] : memref<32x128xf32, #tpu.memory_space<vmem>>, vector<32x128xf32>
      tpu.vector_store %arg5[%c0_52, %c0_53], %108 {strides = array<i32>} : memref<32x128xf32, #tpu.memory_space<vmem>>, vector<32x128xf32>,
      %cst_54 = arith.constant 0xFF800000 : f32
      %111 = vector.broadcast %cst_54 : f32 to vector<1x32xf32>
      %c0_55 = arith.constant 0 : index
      %c0_56 = arith.constant 0 : index
      %112 = vector.load %arg6[%c0_55, %c0_56] : memref<1x32xf32, #tpu.memory_space<vmem>>, vector<1x32xf32>
      tpu.vector_store %arg6[%c0_55, %c0_56], %111 {strides = array<i32>} : memref<1x32xf32, #tpu.memory_space<vmem>>, vector<1x32xf32>,
      %cst_57 = arith.constant 0.000000e+00 : f32
      %113 = vector.broadcast %cst_57 : f32 to vector<1x32xf32>
      %c0_58 = arith.constant 0 : index
      %c0_59 = arith.constant 0 : index
      %114 = vector.load %arg7[%c0_58, %c0_59] : memref<1x32xf32, #tpu.memory_space<vmem>>, vector<1x32xf32>
      tpu.vector_store %arg7[%c0_58, %c0_59], %113 {strides = array<i32>} : memref<1x32xf32, #tpu.memory_space<vmem>>, vector<1x32xf32>,
      %cst_60 = arith.constant 0.000000e+00 : f32
      %115 = vector.broadcast %cst_60 : f32 to vector<1x1xf32>
      %c0_61 = arith.constant 0 : index
      %c0_62 = arith.constant 0 : index
      %116 = vector.load %arg8[%c0_61, %c0_62] : memref<1x1xf32, #tpu.memory_space<vmem>>, vector<1x1xf32>
      tpu.vector_store %arg8[%c0_61, %c0_62], %115 {strides = array<i32>} : memref<1x1xf32, #tpu.memory_space<vmem>>, vector<1x1xf32>,
      %cst_63 = arith.constant 0.000000e+00 : f32
      %117 = vector.broadcast %cst_63 : f32 to vector<1x1xf32>
      %c0_64 = arith.constant 0 : index
      %c0_65 = arith.constant 0 : index
      %118 = vector.load %arg9[%c0_64, %c0_65] : memref<1x1xf32, #tpu.memory_space<vmem>>, vector<1x1xf32>
      tpu.vector_store %arg9[%c0_64, %c0_65], %117 {strides = array<i32>} : memref<1x1xf32, #tpu.memory_space<vmem>>, vector<1x1xf32>,
    } else {
    }
    %c8_i32 = arith.constant 8 : i32
    %3 = arith.muli %arg0, %c8_i32 : i32
    %4 = tpu.assume_multiple %3, 8 : i32
    %5 = arith.index_cast %4 : i32 to index
    %c0 = arith.constant 0 : index
    %6 = vector.load %arg4[%5, %c0] : memref<32x128xf32, #tpu.memory_space<vmem>>, vector<8x128xf32>
    %7 = arith.index_cast %4 : i32 to index
    %c0_1 = arith.constant 0 : index
    %8 = vector.load %arg5[%7, %c0_1] : memref<32x128xf32, #tpu.memory_space<vmem>>, vector<8x128xf32>
    %c0_2 = arith.constant 0 : index
    %c0_3 = arith.constant 0 : index
    %9 = vector.load %arg4[%c0_2, %c0_3] : memref<32x128xf32, #tpu.memory_space<vmem>>, vector<32x128xf32>
    %c0_4 = arith.constant 0 : index
    %c0_5 = arith.constant 0 : index
    %10 = vector.load %arg5[%c0_4, %c0_5] : memref<32x128xf32, #tpu.memory_space<vmem>>, vector<32x128xf32>
    %cst = arith.constant dense<0.000000e+00> : vector<8x32xf32>
    %11 = tpu.matmul %6, %10, %cst {dimension_numbers = #tpu.dot_dimension_numbers<[1], [1], [0], [0], [0, 0, 1, 0], [], []>} : vector<8x128xf32>, vector<32x128xf32>, vector<8x32xf32> -> vector<8x32xf32>
    %cst_6 = arith.constant 2.000000e+00 : f32
    %12 = vector.broadcast %cst_6 : f32 to vector<8x32xf32>
    %13 = arith.mulf %11, %12 : vector<8x32xf32>
    %cst_7 = arith.constant dense<0.000000e+00> : vector<8x32xf32>
    %14 = tpu.matmul %6, %9, %cst_7 {dimension_numbers = #tpu.dot_dimension_numbers<[1], [1], [0], [0], [0, 0, 1, 0], [], []>} : vector<8x128xf32>, vector<32x128xf32>, vector<8x32xf32> -> vector<8x32xf32>
    %cst_8 = arith.constant 2.000000e+00 : f32
    %15 = vector.broadcast %cst_8 : f32 to vector<8x32xf32>
    %16 = arith.mulf %14, %15 : vector<8x32xf32>
    %cst_9 = arith.constant dense<0.000000e+00> : vector<8x32xf32>
    %17 = tpu.matmul %8, %10, %cst_9 {dimension_numbers = #tpu.dot_dimension_numbers<[1], [1], [0], [0], [0, 0, 1, 0], [], []>} : vector<8x128xf32>, vector<32x128xf32>, vector<8x32xf32> -> vector<8x32xf32>
    %cst_10 = arith.constant 2.000000e+00 : f32
    %18 = vector.broadcast %cst_10 : f32 to vector<8x32xf32>
    %19 = arith.mulf %17, %18 : vector<8x32xf32>
    %20 = tpu.iota {dimensions = array<i32: 0>} : vector<8x32xi32>
    %21 = tpu.iota {dimensions = array<i32: 1>} : vector<8x32xi32>
    %22 = vector.broadcast %4 : i32 to vector<8x32xi32>
    %23 = arith.addi %20, %22 : vector<8x32xi32>
    %24 = arith.cmpi eq, %21, %23 : vector<8x32xi32>
    %cst_11 = arith.constant 1.000000e+09 : f32
    %cst_12 = arith.constant 0.000000e+00 : f32
    %25 = vector.broadcast %cst_11 : f32 to vector<8x32xf32>
    %26 = vector.broadcast %cst_12 : f32 to vector<8x32xf32>
    %27 = arith.select %24, %25, %26 : vector<8x32xi1>, vector<8x32xf32>
    %28 = arith.subf %16, %27 : vector<8x32xf32>
    %29 = arith.subf %19, %27 : vector<8x32xf32>
    %cst_13 = arith.constant dense<0xFF800000> : vector<8xf32>
    %30 = vector.multi_reduction <maximumf>, %13, %cst_13 [1] : vector<8x32xf32> to vector<8xf32>
    %31 = vector.shape_cast %30 : vector<8xf32> to vector<8x1xf32>
    %cst_14 = arith.constant dense<0xFF800000> : vector<8xf32>
    %32 = vector.multi_reduction <maximumf>, %28, %cst_14 [1] : vector<8x32xf32> to vector<8xf32>
    %33 = vector.shape_cast %32 : vector<8xf32> to vector<8x1xf32>
    %34 = arith.maximumf %31, %33 : vector<8x1xf32>
    %35 = vector.broadcast %34 : vector<8x1xf32> to vector<8x32xf32>
    %36 = arith.subf %13, %35 : vector<8x32xf32>
    %37 = math.exp %36 : vector<8x32xf32>
    %cst_15 = arith.constant dense<0.000000e+00> : vector<8xf32>
    %38 = vector.multi_reduction <add>, %37, %cst_15 [1] : vector<8x32xf32> to vector<8xf32>
    %39 = vector.shape_cast %38 : vector<8xf32> to vector<8x1xf32>
    %40 = vector.broadcast %34 : vector<8x1xf32> to vector<8x32xf32>
    %41 = arith.subf %28, %40 : vector<8x32xf32>
    %42 = math.exp %41 : vector<8x32xf32>
    %cst_16 = arith.constant dense<0.000000e+00> : vector<8xf32>
    %43 = vector.multi_reduction <add>, %42, %cst_16 [1] : vector<8x32xf32> to vector<8xf32>
    %44 = vector.shape_cast %43 : vector<8xf32> to vector<8x1xf32>
    %45 = arith.addf %39, %44 : vector<8x1xf32>
    %c0_17 = arith.constant 0 : index
    %c0_18 = arith.constant 0 : index
    %46 = vector.load %arg8[%c0_17, %c0_18] : memref<1x1xf32, #tpu.memory_space<vmem>>, vector<1x1xf32>
    %47 = math.log %45 : vector<8x1xf32>
    %48 = arith.addf %34, %47 : vector<8x1xf32>
    %cst_19 = arith.constant dense<0.000000e+00> : vector<1xf32>
    %49 = vector.multi_reduction <add>, %48, %cst_19 [0] : vector<8x1xf32> to vector<1xf32>
    %50 = vector.shape_cast %49 : vector<1xf32> to vector<1x1xf32>
    %51 = arith.addf %46, %50 : vector<1x1xf32>
    %c0_20 = arith.constant 0 : index
    %c0_21 = arith.constant 0 : index
    %52 = vector.load %arg8[%c0_20, %c0_21] : memref<1x1xf32, #tpu.memory_space<vmem>>, vector<1x1xf32>
    tpu.vector_store %arg8[%c0_20, %c0_21], %51 {strides = array<i32>} : memref<1x1xf32, #tpu.memory_space<vmem>>, vector<1x1xf32>,
    %cst_22 = arith.constant dense<0xFF800000> : vector<32xf32>
    %53 = vector.multi_reduction <maximumf>, %13, %cst_22 [0] : vector<8x32xf32> to vector<32xf32>
    %54 = vector.shape_cast %53 : vector<32xf32> to vector<1x32xf32>
    %cst_23 = arith.constant dense<0xFF800000> : vector<32xf32>
    %55 = vector.multi_reduction <maximumf>, %29, %cst_23 [0] : vector<8x32xf32> to vector<32xf32>
    %56 = vector.shape_cast %55 : vector<32xf32> to vector<1x32xf32>
    %57 = arith.maximumf %54, %56 : vector<1x32xf32>
    %c0_24 = arith.constant 0 : index
    %c0_25 = arith.constant 0 : index
    %58 = vector.load %arg6[%c0_24, %c0_25] : memref<1x32xf32, #tpu.memory_space<vmem>>, vector<1x32xf32>
    %59 = arith.maximumf %58, %57 : vector<1x32xf32>
    %60 = vector.broadcast %59 : vector<1x32xf32> to vector<8x32xf32>
    %61 = arith.subf %13, %60 : vector<8x32xf32>
    %62 = math.exp %61 : vector<8x32xf32>
    %cst_26 = arith.constant dense<0.000000e+00> : vector<32xf32>
    %63 = vector.multi_reduction <add>, %62, %cst_26 [0] : vector<8x32xf32> to vector<32xf32>
    %64 = vector.shape_cast %63 : vector<32xf32> to vector<1x32xf32>
    %65 = vector.broadcast %59 : vector<1x32xf32> to vector<8x32xf32>
    %66 = arith.subf %29, %65 : vector<8x32xf32>
    %67 = math.exp %66 : vector<8x32xf32>
    %cst_27 = arith.constant dense<0.000000e+00> : vector<32xf32>
    %68 = vector.multi_reduction <add>, %67, %cst_27 [0] : vector<8x32xf32> to vector<32xf32>
    %69 = vector.shape_cast %68 : vector<32xf32> to vector<1x32xf32>
    %70 = arith.addf %64, %69 : vector<1x32xf32>
    %c0_28 = arith.constant 0 : index
    %c0_29 = arith.constant 0 : index
    %71 = vector.load %arg7[%c0_28, %c0_29] : memref<1x32xf32, #tpu.memory_space<vmem>>, vector<1x32xf32>
    %72 = arith.subf %58, %59 : vector<1x32xf32>
    %73 = math.exp %72 : vector<1x32xf32>
    %74 = arith.mulf %71, %73 : vector<1x32xf32>
    %75 = arith.addf %74, %70 : vector<1x32xf32>
    %c0_30 = arith.constant 0 : index
    %c0_31 = arith.constant 0 : index
    %76 = vector.load %arg7[%c0_30, %c0_31] : memref<1x32xf32, #tpu.memory_space<vmem>>, vector<1x32xf32>
    tpu.vector_store %arg7[%c0_30, %c0_31], %75 {strides = array<i32>} : memref<1x32xf32, #tpu.memory_space<vmem>>, vector<1x32xf32>,
    %c0_32 = arith.constant 0 : index
    %c0_33 = arith.constant 0 : index
    %77 = vector.load %arg6[%c0_32, %c0_33] : memref<1x32xf32, #tpu.memory_space<vmem>>, vector<1x32xf32>
    tpu.vector_store %arg6[%c0_32, %c0_33], %59 {strides = array<i32>} : memref<1x32xf32, #tpu.memory_space<vmem>>, vector<1x32xf32>,
    %78 = arith.mulf %6, %8 : vector<8x128xf32>
    %cst_34 = arith.constant dense<0.000000e+00> : vector<8xf32>
    %79 = vector.multi_reduction <add>, %78, %cst_34 [1] : vector<8x128xf32> to vector<8xf32>
    %80 = vector.shape_cast %79 : vector<8xf32> to vector<8x1xf32>
    %cst_35 = arith.constant dense<0.000000e+00> : vector<1xf32>
    %81 = vector.multi_reduction <add>, %80, %cst_35 [0] : vector<8x1xf32> to vector<1xf32>
    %82 = vector.shape_cast %81 : vector<1xf32> to vector<1x1xf32>
    %cst_36 = arith.constant 2.000000e+00 : f32
    %83 = vector.broadcast %cst_36 : f32 to vector<1x1xf32>
    %84 = arith.mulf %82, %83 : vector<1x1xf32>
    %c0_37 = arith.constant 0 : index
    %c0_38 = arith.constant 0 : index
    %85 = vector.load %arg9[%c0_37, %c0_38] : memref<1x1xf32, #tpu.memory_space<vmem>>, vector<1x1xf32>
    %86 = arith.addf %85, %84 : vector<1x1xf32>
    %c0_39 = arith.constant 0 : index
    %c0_40 = arith.constant 0 : index
    %87 = vector.load %arg9[%c0_39, %c0_40] : memref<1x1xf32, #tpu.memory_space<vmem>>, vector<1x1xf32>
    tpu.vector_store %arg9[%c0_39, %c0_40], %86 {strides = array<i32>} : memref<1x1xf32, #tpu.memory_space<vmem>>, vector<1x1xf32>,
    %c3_i32 = arith.constant 3 : i32
    %88 = arith.cmpi eq, %arg0, %c3_i32 : i32
    %89 = arith.extui %88 : i1 to i32
    %c0_i32_41 = arith.constant 0 : i32
    %90 = arith.cmpi ne, %89, %c0_i32_41 : i32
    scf.if %90 {
      %c0_42 = arith.constant 0 : index
      %c0_43 = arith.constant 0 : index
      %91 = vector.load %arg6[%c0_42, %c0_43] : memref<1x32xf32, #tpu.memory_space<vmem>>, vector<1x32xf32>
      %c0_44 = arith.constant 0 : index
      %c0_45 = arith.constant 0 : index
      %92 = vector.load %arg7[%c0_44, %c0_45] : memref<1x32xf32, #tpu.memory_space<vmem>>, vector<1x32xf32>
      %93 = math.log %92 : vector<1x32xf32>
      %94 = arith.addf %91, %93 : vector<1x32xf32>
      %c0_46 = arith.constant 0 : index
      %c0_47 = arith.constant 0 : index
      %95 = vector.load %arg8[%c0_46, %c0_47] : memref<1x1xf32, #tpu.memory_space<vmem>>, vector<1x1xf32>
      %cst_48 = arith.constant dense<0.000000e+00> : vector<1xf32>
      %96 = vector.multi_reduction <add>, %94, %cst_48 [1] : vector<1x32xf32> to vector<1xf32>
      %97 = vector.shape_cast %96 : vector<1xf32> to vector<1x1xf32>
      %98 = arith.addf %95, %97 : vector<1x1xf32>
      %c0_49 = arith.constant 0 : index
      %c0_50 = arith.constant 0 : index
      %99 = vector.load %arg9[%c0_49, %c0_50] : memref<1x1xf32, #tpu.memory_space<vmem>>, vector<1x1xf32>
      %cst_51 = arith.constant 2.000000e+00 : f32
      %100 = vector.broadcast %cst_51 : f32 to vector<1x1xf32>
      %101 = arith.mulf %100, %99 : vector<1x1xf32>
      %102 = arith.subf %98, %101 : vector<1x1xf32>
      %cst_52 = arith.constant 1.562500e-02 : f32
      %103 = vector.broadcast %cst_52 : f32 to vector<1x1xf32>
      %104 = arith.mulf %102, %103 : vector<1x1xf32>
      %c0_53 = arith.constant 0 : index
      %c0_54 = arith.constant 0 : index
      %105 = vector.load %arg3[%c0_53, %c0_54] : memref<1x1xf32, #tpu.memory_space<vmem>>, vector<1x1xf32>
      tpu.vector_store %arg3[%c0_53, %c0_54], %104 {strides = array<i32>} : memref<1x1xf32, #tpu.memory_space<vmem>>, vector<1x1xf32>,
    } else {
    }
    return
  }
  func.func @transform_0(%arg0: i32) -> (i32, i32) {
    %c0_i32 = arith.constant 0 : i32
    %c0_i32_0 = arith.constant 0 : i32
    %c0_i32_1 = arith.constant 0 : i32
    return %c0_i32, %c0_i32_0 : i32, i32
  }
  func.func @transform_1(%arg0: i32) -> (i32, i32) {
    %c0_i32 = arith.constant 0 : i32
    %c0_i32_0 = arith.constant 0 : i32
    %c0_i32_1 = arith.constant 0 : i32
    return %c0_i32, %c0_i32_0 : i32, i32
  }
  func.func @transform_2(%arg0: i32) -> (i32, i32) {
    %c0_i32 = arith.constant 0 : i32
    %c0_i32_0 = arith.constant 0 : i32
    %c0_i32_1 = arith.constant 0 : i32
    return %c0_i32, %c0_i32_0 : i32, i32
  }
}

</mosaic_0001>

<bundles_post_ra>
// kernel: tpu_custom_call.1
= control target key start
LH: loop header
LB: loop body
LE: loop exit
PB: predicated region body
PF: predicated region fallthrough
CT: control target
= control target key end

     0   :  { %7 = vsyncpa [#allocation9], 0  ;;  %s978_s0 = inlined_call_operand.hbm [shape: f32[32,128], index: 0, kind: input, shape index: {}]   ;;  %s979_s1 = inlined_call_operand.hbm [shape: f32[32,128], index: 1, kind: input, shape index: {}]   ;;  %s980_s2 = inlined_call_operand.hbm [shape: f32[1,1], index: 2, kind: output, shape index: {}]  }
   0x1   :  { %8 = vsyncpa [#allocation12], 0 }
   0x2   :  { %9 = vsyncpa [#allocation10], 0  ;;  %s882_s9 = smov 0  }
   0x3 LB: > { %s888_s10 = sadd.s32 4294967295, %s856_s9   ;;  %p629_p0 = scmp.ge.s32.totalorder %s856_s9, 1  ;;  %s856_s9 = sphi %s882_s9, %s15_s9  }
   0x4   : > { %p83_p1 = scmp.lt.s32.totalorder %s856_s9, 5  ;;  %s858_s11 = smov [#allocation8]  }
   0x5   : > { %s95_s12 = sshll.u32 %s858_s11, 4  ;;  %p709_p4 = scmp.eq.s32.totalorder %s888_s10, 0  ;;  %s96_s12 = int_to_ptr.vmem [resolvable:$true] %s95_s12 }
   0x6   : > { %p893_p3 = pnand %p629_p0, %p83_p1  ;;  %s859_s14 = smov [#allocation11]  }
   0x7   : > { %s108_s15 = sshll.u32 %s859_s14, 4  ;;  %s773_s17 = scalar_lea.vmem %s96_s12, 512  ;;  %s109_s15 = int_to_ptr.vmem [resolvable:$true] %s108_s15 }
   0x8   : > { %p702_p5 = pneg %p893_p3  ;;  %p774_p8 = scmp.ne.s32.totalorder %s96_s12, %s773_s17 }
   0x9   : > { %p781_p11 = scmp.lt.s32.totalorder %s96_s12, %s96_s12  ;;  %p782_p12 = scmp.lt.s32.totalorder %s773_s17, %s773_s17 }
   0xa   : > { %p902_p6 = pnand %p709_p4, %p702_p5 }
   0xb   : > { %p783_p13 = por %p782_p12, %p781_p11 }
   0xc   : > { %p764_p7 = pneg %p902_p6 }
   0xe   : > { %p776_p9 = pnand %p774_p8, %p764_p7 }
  0x10   : > { %p777_p10 = pneg %p776_p9 }
  0x12   : > { %p784_p0 = pnand %p783_p13, %p777_p10 }
  0x14   : > { %787 = shalt.err (!%p784_p0)
}
  0x15   : > { %s860_s18 = smov 128   ;;  %s861_s19 = smov 8  }
  0x16   : > { %705 = dma.hbm_to_vmem [thread:$0]  (!%p902_p6), %s978_s0, 512, %s96_s12, [#allocation9], %s860_s18, %s860_s18, %s861_s19  }
  0x17   : > { %s799_s22 = scalar_lea.vmem %s109_s15, 512  ;;  %p807_p9 = scmp.lt.s32.totalorder %s109_s15, %s109_s15 }
  0x18   : > { %p800_p1 = scmp.ne.s32.totalorder %s109_s15, %s799_s22  ;;  %p808_p2 = scmp.lt.s32.totalorder %s799_s22, %s799_s22 }
  0x1a   : > { %p802_p5 = pnand %p800_p1, %p764_p7  ;;  %p809_p11 = por %p808_p2, %p807_p9 }
  0x1c   : > { %p803_p8 = pneg %p802_p5 }
  0x1e   : > { %p810_p10 = pnand %p809_p11, %p803_p8 }
  0x20   : > { %813 = shalt.err (!%p810_p10)
}
  0x21   : > { %708 = dma.hbm_to_vmem [thread:$0]  (!%p902_p6), %s979_s1, 512, %s109_s15, [#allocation12], %s860_s18, %s860_s18, %s861_s19  }
  0x22   : > { %124 = sbr.rel (%p893_p3) target bundleno = 959 (0x3bf), region = 28 }
  0x27   : > { %843 = dma.done.wait (%p709_p4), [#allocation9], 512  }
  0x28   : > { %845 = vsyncadd (%p709_p4), [#allocation9], 4294966784 }
  0x29   : > { %847 = dma.done.wait (%p709_p4), [#allocation12], 512  }
  0x2a   : > { %849 = vsyncadd (%p709_p4), [#allocation12], 4294966784  ;;  %p983_p2 = scmp.ne.s32.totalorder %s888_s10, 0 }
  0x2c   : > { %143 = sbr.rel (%p983_p2) target bundleno = 222 (0xde), region = 40 }
  0x31   : > { %v146_v0 = vld [vmem:[#allocation8 + $0x10] sm:$0xff]  ;;  %v144_v1 = vld [vmem:[#allocation8] sm:$0xff]  ;;  %v147_v2 = vld [vmem:[#allocation8 + $0x18] sm:$0xff]  ;;  %vm208_vm0 = vcmask 253952   ;;  %vm211_vm1 = vcmask 0   ;;  %v862_v16 = vmov -inf  }
  0x32   : > { %v154_v3 = vmul.f32 %v146_v0, %v146_v0  ;;  %v152_v4 = vmul.f32 %v144_v1, %v144_v1  ;;  %v145_v5 = vld [vmem:[#allocation8 + $0x8] sm:$0xff]  ;;  %v155_v6 = vmul.f32 %v147_v2, %v147_v2  ;;  %v148_v9 = vld [vmem:[#allocation11] sm:$0xff]  ;;  %v151_v12 = vld [vmem:[#allocation11 + $0x18] sm:$0xff]  ;;  %209 = vst.msk [vmem:[#allocation4] sm:$0x1] %vm208_vm0, %v862_v16  ;;  %v863_v17 = vmov 0.0  }
  0x33   : > { %v153_v7 = vmul.f32 %v145_v5, %v145_v5  ;;  %v149_v8 = vld [vmem:[#allocation11 + $0x8] sm:$0xff]  ;;  %v176_v11 = vmul.f32 %v148_v9, %v148_v9  ;;  %v150_v13 = vld [vmem:[#allocation11 + $0x10] sm:$0xff]  ;;  %v179_v14 = vmul.f32 %v151_v12, %v151_v12  ;;  %210 = vst.msk [vmem:[#allocation5] sm:$0x1] %vm208_vm0, %v863_v17 }
  0x34   : > { %160 = vadd.xlane.f32.xlu1 %v154_v3  ;;  %156 = vadd.xlane.f32.xlu0 %v152_v4  ;;  %v177_v10 = vmul.f32 %v149_v8, %v149_v8  ;;  %v178_v15 = vmul.f32 %v150_v13, %v150_v13  ;;  %212 = vst.msk [vmem:[#allocation6] sm:$0x1] %vm211_vm1, %v863_v17  ;;  %213 = vst.msk [vmem:[#allocation7] sm:$0x1] %vm211_vm1, %v863_v17 }
  0x38   : > { %162 = vadd.xlane.f32.xlu1 %v155_v6  ;;  %158 = vadd.xlane.f32.xlu0 %v153_v7 }
  0x3c   : > { %182 = vadd.xlane.f32.xlu1 %v177_v10  ;;  %180 = vadd.xlane.f32.xlu0 %v176_v11 }
  0x40   : > { %186 = vadd.xlane.f32.xlu1 %v179_v14  ;;  %184 = vadd.xlane.f32.xlu0 %v178_v15 }
  0xbd   : > { %v161_v18 = vpop.xlane.xlu1 %160  ;;  %v157_v19 = vpop.xlane.xlu0 %156 }
  0xbe   : > { %v166_v20 = vmax.f32 %v161_v18, 1e-24  ;;  %v164_v21 = vmax.f32 %v157_v19, 1e-24 }
  0xc0   : > { %732 = vrsqrt.f32 %v166_v20 }
  0xc1   : > { %734 = vrsqrt.f32 %v164_v21  ;;  %v163_v22 = vpop.xlane.xlu1 %162  ;;  %v159_v23 = vpop.xlane.xlu0 %158 }
  0xc2   : > { %v167_v24 = vmax.f32 %v163_v22, 1e-24  ;;  %v165_v25 = vmax.f32 %v159_v23, 1e-24 }
  0xc4   : > { %736 = vrsqrt.f32 %v167_v24 }
  0xc5   : > { %738 = vrsqrt.f32 %v165_v25  ;;  %v183_v26 = vpop.xlane.xlu1 %182  ;;  %v181_v27 = vpop.xlane.xlu0 %180 }
  0xc6   : > { %v189_v28 = vmax.f32 %v183_v26, 1e-24  ;;  %v188_v29 = vmax.f32 %v181_v27, 1e-24 }
  0xc8   : > { %740 = vrsqrt.f32 %v189_v28 }
  0xc9   : > { %742 = vrsqrt.f32 %v188_v29  ;;  %v187_v30 = vpop.xlane.xlu1 %186  ;;  %v185_v31 = vpop.xlane.xlu0 %184 }
  0xca   : > { %v191_v32 = vmax.f32 %v187_v30, 1e-24  ;;  %v190_v33 = vmax.f32 %v185_v31, 1e-24 }
  0xcc   : > { %744 = vrsqrt.f32 %v191_v32 }
  0xcd   : > { %v733_v34 = vpop.eup %732  ;;  %746 = vrsqrt.f32 %v190_v33 }
  0xce   : > { %v735_v35 = vpop.eup %734  ;;  %v174_v36 = vmul.f32 %v733_v34, %v146_v0 }
  0xcf   : > { %v172_v37 = vmul.f32 %v735_v35, %v144_v1 }
  0xd0   : > { %202 = vst [vmem:[#allocation2 + $0x10] sm:$0xff] %v174_v36 }
  0xd1   : > { %v737_v38 = vpop.eup %736  ;;  %200 = vst [vmem:[#allocation2] sm:$0xff] %v172_v37 }
  0xd2   : > { %v739_v39 = vpop.eup %738  ;;  %v175_v40 = vmul.f32 %v737_v38, %v147_v2 }
  0xd3   : > { %v173_v41 = vmul.f32 %v739_v39, %v145_v5 }
  0xd4   : > { %203 = vst [vmem:[#allocation2 + $0x18] sm:$0xff] %v175_v40 }
  0xd5   : > { %v741_v42 = vpop.eup %740  ;;  %201 = vst [vmem:[#allocation2 + $0x8] sm:$0xff] %v173_v41 }
  0xd6   : > { %v743_v43 = vpop.eup %742  ;;  %v197_v44 = vmul.f32 %v741_v42, %v149_v8 }
  0xd7   : > { %v196_v45 = vmul.f32 %v743_v43, %v148_v9 }
  0xd8   : > { %205 = vst [vmem:[#allocation3 + $0x8] sm:$0xff] %v197_v44 }
  0xd9   : > { %v745_v46 = vpop.eup %744  ;;  %204 = vst [vmem:[#allocation3] sm:$0xff] %v196_v45 }
  0xda   : > { %v747_v47 = vpop.eup %746  ;;  %v199_v48 = vmul.f32 %v745_v46, %v151_v12 }
  0xdb   : > { %v198_v49 = vmul.f32 %v747_v47, %v150_v13 }
  0xdc   : > { %207 = vst [vmem:[#allocation3 + $0x18] sm:$0xff] %v199_v48 }
  0xdd   : > { %206 = vst [vmem:[#allocation3 + $0x10] sm:$0xff] %v198_v49 }
  0xde PF: > { %v222_v51 = vld [vmem:[#allocation2 + $0x18] sm:$0xff]  ;;  %v864_v52 = vmov 0.0   ;;  %v221_v54 = vld [vmem:[#allocation2 + $0x10] sm:$0xff]  ;;  %vm865_vm2 = vmmov 0   ;;  %v220_v56 = vld [vmem:[#allocation2 + $0x8] sm:$0xff]  ;;  %s636_s25 = sshll.u32 %s888_s10, 3  ;;  %v440_v61 = vlaneseq }
  0xdf   : > { %657 = vmatprep.subr.mxu0 %v864_v52  ;;  %668 = vmatprep.subr.mxu1 %v864_v52  ;;  %v224_v55 = vld [vmem:[#allocation3 + $0x8] sm:$0xff]  ;;  %v219_v58 = vld [vmem:[#allocation2] sm:$0xff]  ;;  %s215_s26 = scalar_lea.vmem [#allocation2], %s636_s25  ;;  %s217_s27 = scalar_lea.vmem [#allocation3], %s636_s25  ;;  %v444_v63 = vstv %s636_s25  ;;  %vm450_vm4 = vcmask 261120   ;;  %vm533_vm5 = vcmask 253952  }
  0xe0   : > { %669 = vmatpush3.xpose.msra.mxu1 %v222_v51  ;;  %665 = vmatprep.mubr.msk.f32.mxu0 %vm865_vm2, %v864_v52  ;;  %v223_v57 = vld [vmem:[#allocation3] sm:$0xff]  ;;  %v441_v62 = vshrl.u32 %v440_v61, 7  ;;  %v443_v0 = vand.u32 127, %v440_v61  ;;  %vm482_vm6 = vcmask 0   ;;  %p637_p3 = scmp.ne.s32.totalorder %s888_s10, 3 }
  0xe1   : > { %670 = vmatprep.subr.mxu1 %v864_v52  ;;  %676 = vmatprep.mubr.msk.f32.mxu1 %vm865_vm2, %v864_v52  ;;  %v216_v59 = vld [vmem:[%s215_s26] sm:$0xff] }
  0xe2   : > { %v445_v1 = vadd.s32 %v444_v63, %v441_v62  ;;  %v498_v29 = vld [vmem:[#allocation4] sm:$0x1]  ;;  %v503_v31 = vsub.s32 0, %v441_v62 }
  0xe3   : > { %v226_v50 = vld [vmem:[#allocation3 + $0x18] sm:$0xff] }
  0xe4   : > { %658 = vmatpush3.xpose.msra.mxu0 %v226_v50  ;;  %v225_v53 = vld [vmem:[#allocation3 + $0x10] sm:$0xff]  ;;  %671 = vmatpush3.xpose.msra.mxu1 %v221_v54  ;;  %v218_v60 = vld [vmem:[%s217_s27] sm:$0xff]  ;;  %vm446_vm3 = vcmp.eq.s32.totalorder %v443_v0, %v445_v1 }
  0xe5   : > { %659 = vmatprep.subr.mxu0 %v864_v52  ;;  %672 = vmatprep.subr.mxu1 %v864_v52  ;;  %v447_v4 = vsel %vm446_vm3, 1e+09, %v864_v52  ;;  %v536_v38 = vmul.f32 %v218_v60, %v216_v59 }
  0xe8   : > { %660 = vmatpush3.xpose.msra.mxu0 %v225_v53  ;;  %673 = vmatpush3.xpose.msra.mxu1 %v220_v56 }
  0xe9   : > { %661 = vmatprep.subr.mxu0 %v864_v52  ;;  %674 = vmatprep.subr.mxu1 %v864_v52 }
  0xec   : > { %662 = vmatpush3.xpose.msra.mxu0 %v224_v55  ;;  %675 = vmatpush3.xpose.msra.mxu1 %v219_v58 }
  0xed   : > { %663 = vmatprep.subr.mxu0 %v864_v52 }
  0xef   : > { %677 = vmatmul.mubr.f32.vlgmr.msra.gmra.mxu1 %v216_v59 }
  0xf0   : > { %664 = vmatpush3.xpose.msra.mxu0 %v223_v57 }
  0xf1   : > { %679 = vmatprep.subr.mxu0 %v864_v52 }
  0xf3   : > { %666 = vmatmul.mubr.f32.vlgmr.msra.gmra.mxu0 %v216_v59 }
  0xf4   : > { %680 = vmatpush3.xpose.msra.mxu0 %v226_v50  ;;  %687 = vmatprep.mubr.msk.f32.mxu0 %vm865_vm2, %v864_v52 }
  0xf5   : > { %681 = vmatprep.subr.mxu0 %v864_v52 }
  0xf8   : > { %682 = vmatpush3.xpose.msra.mxu0 %v225_v53 }
  0xf9   : > { %683 = vmatprep.subr.mxu0 %v864_v52 }
  0xfc   : > { %684 = vmatpush3.xpose.msra.mxu0 %v224_v55 }
  0xfd   : > { %685 = vmatprep.subr.mxu0 %v864_v52 }
 0x100   : > { %686 = vmatpush3.xpose.msra.mxu0 %v223_v57  ;;  %v527_v57 = vld [vmem:[#allocation5] sm:$0x1] }
 0x103   : > { %688 = vmatmul.mubr.f32.vlgmr.msra.gmra.mxu0 %v218_v60 }
 0x1af   : > { %v364_v3 = vpop.f32.mrf.mxu1 }
 0x1b0   : > { %v368_v6 = vmul.f32 2.0, %v364_v3 }
 0x1b1   : > { %v678_v8 = vpop.f32.mrf.mxu1 }
 0x1b2   : > { %v944_v10 = vsub.f32 %v368_v6, %v447_v4 }
 0x1b3   : > { %v293_v2 = vpop.f32.mrf.mxu0 }
 0x1b4   : > { %v940_v5 = vmul.f32 2.0, %v293_v2  ;;  %v454_v11 = vsel %vm450_vm4, %v944_v10, -inf }
 0x1b5   : > { %v667_v7 = vpop.f32.mrf.mxu0 }
 0x1b6   : > { %v451_v9 = vsel %vm450_vm4, %v940_v5, -inf }
 0x1b7   : > { %452 = vmax.xlane.f32.xlu0 %v451_v9  ;;  %v484_v12 = vrot.slane %v451_v9, 4 }
 0x1b9   : > { %v485_v13 = vmax.f32 %v451_v9, %v484_v12 }
 0x1bb   : > { %455 = vmax.xlane.f32.xlu0 %v454_v11  ;;  %v486_v18 = vrot.slane %v485_v13, 2 }
 0x1bd   : > { %v487_v21 = vmax.f32 %v485_v13, %v486_v18 }
 0x1bf   : > { %v488_v24 = vrot.slane %v487_v21, 1  ;;  %537 = vadd.xlane.f32.xlu0 %v536_v38 }
 0x1c1   : > { %v489_v27 = vmax.f32 %v487_v21, %v488_v24 }
 0x1c3   : > { %v435_v14 = vpop.f32.mrf.mxu0 }
 0x1c4   : > { %v439_v15 = vmul.f32 2.0, %v435_v14 }
 0x1c5   : > { %v689_v16 = vpop.f32.mrf.mxu0 }
 0x1c6   : > { %v449_v17 = vsub.f32 %v439_v15, %v447_v4 }
 0x1c8   : > { %v490_v19 = vsel %vm450_vm4, %v449_v17, -inf }
 0x1c9   : > { %v491_v20 = vrot.slane %v490_v19, 4 }
 0x1cb   : > { %v492_v22 = vmax.f32 %v490_v19, %v491_v20 }
 0x1cd   : > { %v493_v23 = vrot.slane %v492_v22, 2 }
 0x1cf   : > { %v494_v25 = vmax.f32 %v492_v22, %v493_v23 }
 0x1d1   : > { %v495_v26 = vrot.slane %v494_v25, 1 }
 0x1d3   : > { %v496_v28 = vmax.f32 %v494_v25, %v495_v26 }
 0x1d5   : > { %v497_v30 = vmax.f32 %v489_v27, %v496_v28 }
 0x1d7   : > { %v499_v32 = vmax.f32 %v498_v29, %v497_v30  ;;  %v471_v30 = vld [vmem:[#allocation6] sm:$0x1] }
 0x1d9   : > { %v504_v33 = vrot.slane %v499_v32, %v503_v31  ;;  %535 = vst.msk [vmem:[#allocation4] sm:$0x1] %vm533_vm5, %v499_v32  ;;  %v528_v39 = vsub.f32 %v498_v29, %v499_v32 }
 0x1db   : > { %v506_v34 = vsub.f32 %v940_v5, %v504_v33  ;;  %v516_v35 = vsub.f32 %v449_v17, %v504_v33  ;;  %v529_v40 = vmul.f32 1.442695, %v528_v39  ;;  %v546_v17 = vld [vmem:[#allocation7] sm:$0x1] }
 0x1dd   : > { %v507_v36 = vmul.f32 1.442695, %v506_v34  ;;  %v517_v37 = vmul.f32 1.442695, %v516_v35 }
 0x1df   : > { %748 = vpow2.f32 %v507_v36 }
 0x1e0   : > { %750 = vpow2.f32 %v517_v37 }
 0x1e1   : > { %752 = vpow2.f32 %v529_v40 }
 0x1ec   : > { %v749_v41 = vpop.eup %748 }
 0x1ed   : > { %v751_v42 = vpop.eup %750  ;;  %v509_v43 = vsel %vm450_vm4, %v749_v41, 0.0 }
 0x1ee   : > { %v510_v44 = vrot.slane %v509_v43, 4  ;;  %v519_v45 = vsel %vm450_vm4, %v751_v42, 0.0  ;;  %v753_v55 = vpop.eup %752 }
 0x1ef   : > { %v520_v46 = vrot.slane %v519_v45, 4  ;;  %v531_v60 = vmul.f32 %v753_v55, %v527_v57 }
 0x1f0   : > { %v511_v47 = vadd.f32 %v510_v44, %v509_v43 }
 0x1f1   : > { %v521_v48 = vadd.f32 %v520_v46, %v519_v45 }
 0x1f2   : > { %v512_v49 = vrot.slane %v511_v47, 2 }
 0x1f3   : > { %v522_v50 = vrot.slane %v521_v48, 2 }
 0x1f4   : > { %v513_v51 = vadd.f32 %v512_v49, %v511_v47 }
 0x1f5   : > { %v523_v52 = vadd.f32 %v522_v50, %v521_v48 }
 0x1f6   : > { %v514_v53 = vrot.slane %v513_v51, 1 }
 0x1f7   : > { %v524_v54 = vrot.slane %v523_v52, 1 }
 0x1f8   : > { %v515_v56 = vadd.f32 %v514_v53, %v513_v51 }
 0x1f9   : > { %v525_v58 = vadd.f32 %v524_v54, %v523_v52 }
 0x1fb   : > { %v526_v59 = vadd.f32 %v525_v58, %v515_v56 }
 0x1fd   : > { %v532_v61 = vadd.f32 %v531_v60, %v526_v59 }
 0x1ff   : > { %534 = vst.msk [vmem:[#allocation5] sm:$0x1] %vm533_vm5, %v532_v61 }
 0x240   : > { %v453_v62 = vpop.xlane.xlu0 %452 }
 0x244   : > { %v456_v63 = vpop.xlane.xlu0 %455 }
 0x245   : > { %v457_v0 = vmax.f32 %v453_v62, %v456_v63 }
 0x247   : > { %v458_v1 = vsub.f32 %v940_v5, %v457_v0  ;;  %v464_v2 = vsub.f32 %v944_v10, %v457_v0 }
 0x248   : > { %v538_v11 = vpop.xlane.xlu0 %537 }
 0x249   : > { %v459_v3 = vmul.f32 1.442695, %v458_v1  ;;  %v465_v4 = vmul.f32 1.442695, %v464_v2  ;;  %v539_v12 = vrot.slane %v538_v11, 4 }
 0x24b   : > { %754 = vpow2.f32 %v459_v3  ;;  %v540_v13 = vadd.f32 %v539_v12, %v538_v11 }
 0x24c   : > { %756 = vpow2.f32 %v465_v4 }
 0x24d   : > { %v541_v14 = vrot.slane %v540_v13, 2 }
 0x24f   : > { %v542_v15 = vadd.f32 %v541_v14, %v540_v13 }
 0x251   : > { %v543_v5 = vrot.slane %v542_v15, 1 }
 0x253   : > { %v544_v16 = vadd.f32 %v543_v5, %v542_v15 }
 0x255   : > { %v545_v10 = vmul.f32 2.0, %v544_v16 }
 0x257   : > { %v547_v18 = vadd.f32 %v546_v17, %v545_v10 }
 0x258   : > { %v755_v6 = vpop.eup %754 }
 0x259   : > { %v461_v7 = vsel %vm450_vm4, %v755_v6, 0.0  ;;  %v757_v8 = vpop.eup %756  ;;  %548 = vst.msk [vmem:[#allocation7] sm:$0x1] %vm482_vm6, %v547_v18 }
 0x25a   : > { %462 = vadd.xlane.f32.xlu1 %v461_v7  ;;  %v467_v9 = vsel %vm450_vm4, %v757_v8, 0.0 }
 0x25e   : > { %468 = vadd.xlane.f32.xlu1 %v467_v9 }
 0x2e3   : > { %v463_v19 = vpop.xlane.xlu1 %462 }
 0x2e7   : > { %v469_v20 = vpop.xlane.xlu1 %468 }
 0x2e8   : > { %v470_v21 = vadd.f32 %v469_v20, %v463_v19 }
 0x2ea   : > { %758 = vlog2.f32 %v470_v21 }
 0x2f7   : > { %v759_v22 = vpop.eup %758 }
 0x2f8   : > { %v473_v23 = vmul.f32 0.6931472, %v759_v22 }
 0x2fa   : > { %v474_v24 = vadd.f32 %v473_v23, %v457_v0 }
 0x2fc   : > { %v475_v25 = vrot.slane %v474_v24, 4 }
 0x2fe   : > { %v476_v26 = vadd.f32 %v475_v25, %v474_v24 }
 0x300   : > { %v477_v27 = vrot.slane %v476_v26, 2 }
 0x302   : > { %v478_v28 = vadd.f32 %v477_v27, %v476_v26 }
 0x304   : > { %v479_v29 = vrot.slane %v478_v28, 1 }
 0x306   : > { %v480_v31 = vadd.f32 %v479_v29, %v478_v28  ;;  %552 = sbr.rel (%p637_p3) target bundleno = 944 (0x3b0), region = 44 }
 0x308   : > { %v481_v32 = vadd.f32 %v480_v31, %v471_v30 }
 0x30a   : > { %483 = vst.msk [vmem:[#allocation6] sm:$0x1] %vm482_vm6, %v481_v32 }
 0x30b   : > { %v554_v33 = vld [vmem:[#allocation5] sm:$0x1]  ;;  %v553_v35 = vld [vmem:[#allocation4] sm:$0x1]  ;;  %v563_v39 = vld [vmem:[#allocation7] sm:$0x1] }
 0x30c   : > { %760 = vlog2.f32 %v554_v33  ;;  %v564_v41 = vmul.f32 2.0, %v563_v39 }
 0x311   : > { %v558_v40 = vld [vmem:[#allocation6] sm:$0x1] }
 0x319   : > { %v761_v34 = vpop.eup %760 }
 0x31a   : > { %v556_v36 = vmul.f32 0.6931472, %v761_v34 }
 0x31c   : > { %v557_v37 = vadd.f32 %v556_v36, %v553_v35 }
 0x31e   : > { %v559_v38 = vsel %vm533_vm5, %v557_v37, 0.0 }
 0x31f   : > { %560 = vadd.xlane.f32.xlu0 %v559_v38 }
 0x3a8   : > { %v561_v42 = vpop.xlane.xlu0 %560 }
 0x3a9   : > { %v562_v43 = vadd.f32 %v561_v42, %v558_v40 }
 0x3ab   : > { %v565_v44 = vsub.f32 %v562_v43, %v564_v41 }
 0x3ad   : > { %v566_v45 = vmul.f32 0.015625, %v565_v44 }
 0x3af   : > { %567 = vst.msk [vmem:[#allocation13] sm:$0x1] %vm482_vm6, %v566_v45 }
 0x3b0 PF: > { %p713_p4 = scmp.eq.s32.totalorder %s888_s10, 3  ;;  %s866_s28 = smov [#allocation13]  }
 0x3b1   : > { %s575_s29 = sshll.u32 %s866_s28, 4  ;;  %s576_s29 = int_to_ptr.vmem [resolvable:$true] %s575_s29 }
 0x3b2   : > { %s814_s30 = scalar_lea.vmem %s576_s29, 16  ;;  %s820_s3 = scalar_lea.vmem %s576_s29, 32 }
 0x3b3   : > { %p815_p6 = scmp.ne.s32.totalorder %s576_s29, %s814_s30  ;;  %p821_p13 = scmp.lt.s32.totalorder %s576_s29, %s576_s29 }
 0x3b4   : > { %p822_p0 = scmp.lt.s32.totalorder %s820_s3, %s814_s30 }
 0x3b5   : > { %p816_p7 = pnand %p815_p6, %p713_p4 }
 0x3b6   : > { %p823_p1 = por %p822_p0, %p821_p13 }
 0x3b7   : > { %p817_p12 = pneg %p816_p7 }
 0x3b9   : > { %p824_p5 = pnand %p823_p1, %p817_p12 }
 0x3bb   : > { %827 = shalt.err (!%p824_p5)
}
 0x3bc   : > { %699 = dma.vmem_to_hbm [thread:$0]  (%p713_p4), %s576_s29, 16, %s980_s2, [#allocation10]  }
 0x3bd   : > { %851 = dma.done.wait (%p713_p4), [#allocation10], 16  }
 0x3be   : > { %853 = vsyncadd (%p713_p4), [#allocation10], 4294967280 }
 0x3bf PF: > { %s15_s9 = sadd.s32 1, %s856_s9  }
 0x3c0   : > { %p12_p8 = scmp.ge.s32.totalorder %s15_s9, 6  }
 0x3c2   :  { %14 = sbr.rel (!%p12_p8) target bundleno = 3 (0x3), region = 71 }
 0x3c7   :  { %588 = vsyncpa [#allocation9], 1 }
 0x3c8   :  { %590 = vsyncpa [#allocation9 + $0x1], 1 }
 0x3c9   :  { %591 = vsyncpa [#allocation12], 1 }
 0x3ca   :  { %592 = vsyncpa [#allocation10], 1 }
 0x3cb   :  { %594 = vsyncpa [#allocation10 + $0x1], 1 }

</bundles_post_ra>
